<compile_context>
chip_gen: v5e
topology: v5e:2x2
jax: 0.10.0
libtpu: 0.0.40
codegen_flags: <defaults>
</compile_context>

<pallas_src>
import math

import jax
import jax.numpy as jnp
from jax.experimental import pallas as pl
from jax.experimental.pallas import tpu as pltpu


# ---------------------------------------------------------------------------
# Kernel A: conv1 + relu + conv2(1x1) + relu, in channel/feature-major layout.
#   x block   : (64_h, TB*64_w)   columns ordered (batch-major, width-minor)
#   output    : (1, TB*64)        == torch.flatten(conv_out, 1), lane-dense
# ---------------------------------------------------------------------------
def conv_kernel(x_ref, w1_ref, b1_ref, w2_ref, b2_ref, out_ref):
    # conv1: (32, 64) @ (64, TB*64) -> (32, TB*64) on the MXU.
    h1 = jnp.dot(w1_ref[...], x_ref[...],
                 preferred_element_type=jnp.float32) + b1_ref[...]
    h1 = jnp.maximum(h1, 0.0)
    # conv2 (1x1, 32 -> 1): weighted channel reduction (VPU/XLU, keeps MXU free).
    h2 = jnp.sum(h1 * w2_ref[...], axis=0, keepdims=True) + b2_ref[...]
    out_ref[...] = jnp.maximum(h2, 0.0)                     # (1, TB*64)


# ---------------------------------------------------------------------------
# Kernel B: fc2/fc1/fc3/fc4 chain, feature-major: activations are (feat, TB).
# ---------------------------------------------------------------------------
def fc_kernel(h2_ref, y_ref, f_ref,
              fc1w_ref, fc1b_ref, fc2w_ref, fc2b_ref,
              fc3w_ref, fc3f_ref, fc3b_ref, fc4w_ref, fc4b_ref,
              out_ref):
    # fc2 + relu on the conv features (dropout1 = identity in eval mode).
    xx = jnp.dot(fc2w_ref[...], h2_ref[...],
                 preferred_element_type=jnp.float32) + fc2b_ref[...]
    xx = jnp.maximum(xx, 0.0)                               # (32, TB)

    # fc1 on y (no relu in the module; dropout2 = identity in eval mode).
    yy = jnp.dot(fc1w_ref[...], y_ref[...],
                 preferred_element_type=jnp.float32) + fc1b_ref[...]   # (32, TB)

    # fc3 on cat([xx, yy, f]): one fused (32,64) GEMM + rank-1 f term.
    xy = jnp.concatenate([xx, yy], axis=0)                  # (64, TB)
    zz = (jnp.dot(fc3w_ref[...], xy, preferred_element_type=jnp.float32)
          + fc3f_ref[...] * f_ref[...]
          + fc3b_ref[...])                                  # (32, TB)

    # fc4 -> scalar per example: weighted sublane reduce (no N=1 matmul).
    out = jnp.sum(zz * fc4w_ref[...], axis=0, keepdims=True) + fc4b_ref[...]
    out_ref[...] = out                                      # (1, TB) lane-dense


def _round_up(n, m):
    return ((n + m - 1) // m) * m


def regnet_forward(x, y, f, params):
    """x: (B,1,64,64), y: (B,64), f: (B,1) -> (B,)  (== z.view(-1))."""
    (w1, b1, w2, b2, fc1w, fc1b, fc2w, fc2b,
     fc3w, fc3f, fc3b, fc4w, fc4b) = params

    B = x.shape[0]
    H, W = x.shape[2], x.shape[3]                           # 64, 64

    # Batch-block size: big enough to amortize per-step overhead, small enough
    # that double-buffered x blocks (4 MiB at TB=256) fit conservative scoped
    # VMEM limits on v5e/v7x.
    if B <= 256:
        TB = max(8, _round_up(B, 8))
        Bp = TB
    else:
        TB = 256
        Bp = _round_up(B, TB)
    nb = Bp // TB

    pad = Bp - B
    x3 = x[:, 0]                                            # (B, H, W)
    if pad:
        x3 = jnp.pad(x3, ((0, pad), (0, 0), (0, 0)))
        y = jnp.pad(y, ((0, pad), (0, 0)))
        f = jnp.pad(f, ((0, pad), (0, 0)))

    # conv kernel input: (H, Bp*W), columns ordered (batch-major, width-minor).
    xt = jnp.transpose(x3, (1, 0, 2)).reshape(H, Bp * W)

    def resident(a):
        # Constant index_map -> weight stays VMEM-resident across grid steps.
        return pl.BlockSpec(a.shape, lambda i, _nd=a.ndim: (0,) * _nd)

    # ---- Kernel A: conv part ----------------------------------------------
    h2_blocks = pl.pallas_call(
        conv_kernel,
        out_shape=jax.ShapeDtypeStruct((nb, TB * W), jnp.float32),
        grid=(nb,),
        in_specs=[
            pl.BlockSpec((H, TB * W), lambda i: (0, i)),    # x block (64, TB*64)
            resident(w1), resident(b1), resident(w2), resident(b2),
        ],
        out_specs=pl.BlockSpec((1, TB * W), lambda i: (i, 0)),
        compiler_params=pltpu.CompilerParams(
            dimension_semantics=("parallel",),
            vmem_limit_bytes=32 * 1024 * 1024),
    )(xt, w1, b1, w2, b2)

    # Cheap wrapper-side relayout of the tiny h2 activation (Bp*64 floats):
    # (nb, TB*W) -> (Bp, W) is a free reshape; transpose to feature-major.
    h2t = h2_blocks.reshape(Bp, W).T                        # (64, Bp)
    yt = y.T                                                # (64, Bp)
    ft = f.reshape(1, Bp)                                   # (1, Bp)

    # ---- Kernel B: fc chain -------------------------------------------------
    out_blocks = pl.pallas_call(
        fc_kernel,
        out_shape=jax.ShapeDtypeStruct((nb, TB), jnp.float32),
        grid=(nb,),
        in_specs=[
            pl.BlockSpec((W, TB), lambda i: (0, i)),        # h2t
            pl.BlockSpec((y.shape[1], TB), lambda i: (0, i)),  # yt
            pl.BlockSpec((1, TB), lambda i: (0, i)),        # ft
            resident(fc1w), resident(fc1b), resident(fc2w), resident(fc2b),
            resident(fc3w), resident(fc3f), resident(fc3b),
            resident(fc4w), resident(fc4b),
        ],
        out_specs=pl.BlockSpec((1, TB), lambda i: (i, 0)),
        compiler_params=pltpu.CompilerParams(
            dimension_semantics=("parallel",)),
    )(h2t, yt, ft, fc1w, fc1b, fc2w, fc2b, fc3w, fc3f, fc3b, fc4w, fc4b)

    return out_blocks.reshape(Bp)[:B]                       # == z.view(-1)


def init_params(key):
    """Deterministic kaiming_normal weights (fan_in), zero biases.
    Stored in the native PyTorch (out, in) orientation / as columns."""
    ks = jax.random.split(key, 6)

    def kaiming(k, shape, fan_in):
        return jax.random.normal(k, shape, jnp.float32) * math.sqrt(2.0 / fan_in)

    conv1_w = kaiming(ks[0], (32, 1, 64, 1), 1 * 64 * 1)    # Conv2d(1, 32, [64, 1])
    conv2_w = kaiming(ks[1], (1, 32, 1, 1), 32 * 1 * 1)     # Conv2d(32, 1, 1)
    fc1_w = kaiming(ks[2], (32, 64), 64)                    # Linear(64, 32)
    fc2_w = kaiming(ks[3], (32, 64), 64)                    # Linear(64, 32)
    fc3_w = kaiming(ks[4], (32, 65), 65)                    # Linear(65, 32)
    fc4_w = kaiming(ks[5], (1, 32), 32)                     # Linear(32, 1)

    w1 = conv1_w[:, 0, :, 0]                                # (32, 64)
    b1 = jnp.zeros((32, 1), jnp.float32)
    w2 = conv2_w[0, :, 0, 0].reshape(32, 1)                 # (32, 1) channel column
    b2 = jnp.zeros((1, 1), jnp.float32)
    fc1w, fc1b = fc1_w, jnp.zeros((32, 1), jnp.float32)
    fc2w, fc2b = fc2_w, jnp.zeros((32, 1), jnp.float32)
    fc3w = fc3_w[:, :64]                                    # (32, 64) acts on cat([xx, yy])
    fc3f = fc3_w[:, 64:65]                                  # (32, 1)  acts on f
    fc3b = jnp.zeros((32, 1), jnp.float32)
    fc4w = fc4_w.reshape(32, 1)                             # (32, 1) column
    fc4b = jnp.zeros((1, 1), jnp.float32)
    return (w1, b1, w2, b2, fc1w, fc1b, fc2w, fc2b,
            fc3w, fc3f, fc3b, fc4w, fc4b)


def regnet_reference(x, y, f, params):
    """Plain-JAX reference mirroring the PyTorch forward (eval mode)."""
    (w1, b1, w2, b2, fc1w, fc1b, fc2w, fc2b,
     fc3w, fc3f, fc3b, fc4w, fc4b) = params
    xb = x[:, 0]                                            # (B, 64, 64)
    h1 = jnp.einsum('ch,bhw->bcw', w1, xb) + b1[None, :, :]
    h1 = jnp.maximum(h1, 0.0)
    h2 = jnp.einsum('c,bcw->bw', w2[:, 0], h1) + b2[0, 0]
    h2 = jnp.maximum(h2, 0.0)                               # (B, 64) == flatten
    xx = jnp.maximum(h2 @ fc2w.T + fc2b[:, 0], 0.0)
    yy = y @ fc1w.T + fc1b[:, 0]
    z = jnp.concatenate([xx, yy, f], axis=1)                # (B, 65)
    fc3_full = jnp.concatenate([fc3w, fc3f], axis=1)        # (32, 65)
    zz = z @ fc3_full.T + fc3b[:, 0]
    out = zz @ fc4w + fc4b[0, 0]                            # (B, 1)
    return out[:, 0]


if __name__ == "__main__":
    key = jax.random.PRNGKey(0)
    kx, ky, kf, kp = jax.random.split(key, 4)

    # Shapes dictated by the module: conv1 kernel [64,1] needs H=64; flatten
    # must give 64 features (fc2 in=64) -> W=64; fc1 in=64; fc3 in=65 -> f has
    # one feature.  Batch kept small for the smoke test.
    B = 2
    x = jax.random.normal(kx, (B, 1, 64, 64), jnp.float32)
    y = jax.random.normal(ky, (B, 64), jnp.float32)
    f = jax.random.normal(kf, (B, 1), jnp.float32)
    params = init_params(kp)

    out = regnet_forward(x, y, f, params)
    jax.block_until_ready(out)

    ref = regnet_reference(x, y, f, params)
    assert out.shape == (B,), out.shape
    assert jnp.allclose(out, ref, atol=1e-4, rtol=1e-4), (out, ref)

    print("KERNEL_OK")
</pallas_src>

<mosaic_0001>
module attributes {stable_mosaic.version = 11 : i64} {
  func.func @conv_kernel(%arg0: i32, %arg1: memref<64x512xf32, #tpu.memory_space<vmem>>, %arg2: memref<32x64xf32, #tpu.memory_space<vmem>>, %arg3: memref<32x1xf32, #tpu.memory_space<vmem>>, %arg4: memref<32x1xf32, #tpu.memory_space<vmem>>, %arg5: memref<1x1xf32, #tpu.memory_space<vmem>>, %arg6: memref<1x512xf32, #tpu.memory_space<vmem>>) attributes {dimension_semantics = [#tpu.dimension_semantics<parallel>], iteration_bounds = array<i64: 1>, scalar_prefetch = 0 : i64, scratch_operands = 0 : i64, tpu.core_type = #tpu.core_type<tc>, window_params = [{transform_indices = @transform_0, window_bounds = array<i64: 64, 512>}, {pipeline_mode = #tpu.pipeline_mode<synchronous>, transform_indices = @transform_1, window_bounds = array<i64: 32, 64>}, {pipeline_mode = #tpu.pipeline_mode<synchronous>, transform_indices = @transform_2, window_bounds = array<i64: 32, 1>}, {pipeline_mode = #tpu.pipeline_mode<synchronous>, transform_indices = @transform_3, window_bounds = array<i64: 32, 1>}, {pipeline_mode = #tpu.pipeline_mode<synchronous>, transform_indices = @transform_4, window_bounds = array<i64: 1, 1>}, {transform_indices = @transform_5, window_bounds = array<i64: 1, 512>}]} {
    %c0 = arith.constant 0 : index
    %c0_0 = arith.constant 0 : index
    %0 = vector.load %arg2[%c0, %c0_0] : memref<32x64xf32, #tpu.memory_space<vmem>>, vector<32x64xf32>
    %c0_1 = arith.constant 0 : index
    %c0_2 = arith.constant 0 : index
    %1 = vector.load %arg1[%c0_1, %c0_2] : memref<64x512xf32, #tpu.memory_space<vmem>>, vector<64x512xf32>
    %cst = arith.constant dense<0.000000e+00> : vector<32x512xf32>
    %2 = tpu.matmul %0, %1, %cst {dimension_numbers = #tpu.dot_dimension_numbers<[1], [0], [0], [1], [0, 0, 1, 1], [], []>} : vector<32x64xf32>, vector<64x512xf32>, vector<32x512xf32> -> vector<32x512xf32>
    %c0_3 = arith.constant 0 : index
    %c0_4 = arith.constant 0 : index
    %3 = vector.load %arg3[%c0_3, %c0_4] : memref<32x1xf32, #tpu.memory_space<vmem>>, vector<32x1xf32>
    %4 = vector.broadcast %3 : vector<32x1xf32> to vector<32x512xf32>
    %5 = arith.addf %2, %4 : vector<32x512xf32>
    %cst_5 = arith.constant 0.000000e+00 : f32
    %6 = vector.broadcast %cst_5 : f32 to vector<32x512xf32>
    %7 = arith.maximumf %5, %6 : vector<32x512xf32>
    %c0_6 = arith.constant 0 : index
    %c0_7 = arith.constant 0 : index
    %8 = vector.load %arg4[%c0_6, %c0_7] : memref<32x1xf32, #tpu.memory_space<vmem>>, vector<32x1xf32>
    %9 = vector.broadcast %8 : vector<32x1xf32> to vector<32x512xf32>
    %10 = arith.mulf %7, %9 : vector<32x512xf32>
    %cst_8 = arith.constant dense<0.000000e+00> : vector<512xf32>
    %11 = vector.multi_reduction <add>, %10, %cst_8 [0] : vector<32x512xf32> to vector<512xf32>
    %12 = vector.shape_cast %11 : vector<512xf32> to vector<1x512xf32>
    %c0_9 = arith.constant 0 : index
    %c0_10 = arith.constant 0 : index
    %13 = vector.load %arg5[%c0_9, %c0_10] : memref<1x1xf32, #tpu.memory_space<vmem>>, vector<1x1xf32>
    %14 = vector.broadcast %13 : vector<1x1xf32> to vector<1x512xf32>
    %15 = arith.addf %12, %14 : vector<1x512xf32>
    %cst_11 = arith.constant 0.000000e+00 : f32
    %16 = vector.broadcast %cst_11 : f32 to vector<1x512xf32>
    %17 = arith.maximumf %15, %16 : vector<1x512xf32>
    %c0_12 = arith.constant 0 : index
    %c0_13 = arith.constant 0 : index
    %18 = vector.load %arg6[%c0_12, %c0_13] : memref<1x512xf32, #tpu.memory_space<vmem>>, vector<1x512xf32>
    tpu.vector_store %arg6[%c0_12, %c0_13], %17 {strides = array<i32>} : memref<1x512xf32, #tpu.memory_space<vmem>>, vector<1x512xf32>,
    return
  }
  func.func @transform_0(%arg0: i32) -> (i32, i32) {
    %c0_i32 = arith.constant 0 : i32
    %c0_i32_0 = arith.constant 0 : i32
    return %c0_i32, %arg0 : i32, i32
  }
  func.func @transform_1(%arg0: i32) -> (i32, i32) {
    %c0_i32 = arith.constant 0 : i32
    %c0_i32_0 = arith.constant 0 : i32
    %c0_i32_1 = arith.constant 0 : i32
    return %c0_i32, %c0_i32_0 : i32, i32
  }
  func.func @transform_2(%arg0: i32) -> (i32, i32) {
    %c0_i32 = arith.constant 0 : i32
    %c0_i32_0 = arith.constant 0 : i32
    %c0_i32_1 = arith.constant 0 : i32
    return %c0_i32, %c0_i32_0 : i32, i32
  }
  func.func @transform_3(%arg0: i32) -> (i32, i32) {
    %c0_i32 = arith.constant 0 : i32
    %c0_i32_0 = arith.constant 0 : i32
    %c0_i32_1 = arith.constant 0 : i32
    return %c0_i32, %c0_i32_0 : i32, i32
  }
  func.func @transform_4(%arg0: i32) -> (i32, i32) {
    %c0_i32 = arith.constant 0 : i32
    %c0_i32_0 = arith.constant 0 : i32
    %c0_i32_1 = arith.constant 0 : i32
    return %c0_i32, %c0_i32_0 : i32, i32
  }
  func.func @transform_5(%arg0: i32) -> (i32, i32) {
    %c0_i32 = arith.constant 0 : i32
    %c0_i32_0 = arith.constant 0 : i32
    return %arg0, %c0_i32 : i32, i32
  }
}

</mosaic_0001>

<bundles_post_ra>
// kernel: tpu_custom_call.1
= control target key start
LH: loop header
LB: loop body
LE: loop exit
PB: predicated region body
PF: predicated region fallthrough
CT: control target
= control target key end

     0   :  { %s543_s0 = inlined_call_operand.hbm [shape: f32[64,512], index: 0, kind: input, shape index: {}]   ;;  %s544_s1 = inlined_call_operand.vmem [shape: f32[32,64], index: 1, kind: input, shape index: {}]   ;;  %s545_s2 = inlined_call_operand.vmem [shape: f32[32,1], index: 2, kind: input, shape index: {}]   ;;  %s546_s3 = inlined_call_operand.vmem [shape: f32[32,1], index: 3, kind: input, shape index: {}]   ;;  %s547_s4 = inlined_call_operand.<no memory space> [shape: f32[1,1], index: 4, kind: input, shape index: {}]   ;;  %s548_s5 = inlined_call_operand.hbm [shape: f32[1,512], index: 5, kind: output, shape index: {}]  }
   0x1   :  { %v10_v0 = vstv %s547_s4 }
   0x2   :  { %11 = vst [vmem:[#allocation2] sm:$0x1] %v10_v0 }
   0x3   :  { %12 = vsyncpa [#allocation4], 0 }
   0x4   :  { %13 = vsyncpa [#allocation5], 0  ;;  %s18_s22 = sshll.u32 %s543_s0, 4  ;;  %s447_s23 = smov [#allocation3]   ;;  %s19_s22 = int_to_ptr.hbm [resolvable:$true] %s18_s22 }
   0x5   :  { %s20_s24 = sshll.u32 %s447_s23, 4  ;;  %s448_s25 = smov 512   ;;  %s21_s24 = int_to_ptr.vmem [resolvable:$true] %s20_s24 }
   0x6   :  { %s449_s26 = smov 32  }
   0x7   :  { %26 = dma.hbm_to_vmem [thread:$0]  %s19_s22, 4096, %s21_s24, [#allocation4], %s448_s25, %s448_s25, %s449_s26  }
   0x8   :  { %443 = dma.done.wait [#allocation4], 4096  }
   0x9   :  { %444 = vsyncadd [#allocation4], 4294963200  ;;  %v450_v1 = vmov 0   ;;  %v71_v2 = vld [vmem:[#allocation3 + $0xe0] sm:$0xff]  ;;  %v72_v3 = vld [vmem:[#allocation3 + $0xe8] sm:$0xff]  ;;  %vm99_vm0 = vcmask 523264  }
   0xa   :  { %392 = vset.pattern.permute.xlu0 %v450_v1  ;;  %393 = vset.pattern.permute.xlu1 %v450_v1  ;;  %v73_v4 = vld [vmem:[#allocation3 + $0xf0] sm:$0xff]  ;;  %v74_v5 = vld [vmem:[#allocation3 + $0xf8] sm:$0xff]  ;;  %v67_v6 = vld [vmem:[#allocation3 + $0xc0] sm:$0xff]  ;;  %vm342_vm1 = vcmask 1040384   ;;  %vm344_vm2 = vcmask 1042434   ;;  %s361_s25 = sshll.u32 %s548_s5, 4  ;;  %s362_s25 = int_to_ptr.hbm [resolvable:$true] %s361_s25 }
   0xb   :  { %394 = vset.pattern.permute.xlu2 %v450_v1  ;;  %120 = vmatpush.msra.mxu0 %v71_v2  ;;  %v68_v7 = vld [vmem:[#allocation3 + $0xc8] sm:$0xff]  ;;  %v69_v8 = vld [vmem:[#allocation3 + $0xd0] sm:$0xff]  ;;  %v70_v9 = vld [vmem:[#allocation3 + $0xd8] sm:$0xff]  ;;  %vm346_vm3 = vcmask 1041408  }
   0xc   :  { %149 = vmatpush.msra.mxu1 %v72_v3  ;;  %178 = vmatpush.msra.mxu2 %v73_v4  ;;  %v63_v10 = vld [vmem:[#allocation3 + $0xa0] sm:$0xff]  ;;  %v64_v11 = vld [vmem:[#allocation3 + $0xa8] sm:$0xff]  ;;  %v65_v12 = vld [vmem:[#allocation3 + $0xb0] sm:$0xff] }
   0xd   :  { %207 = vmatpush.msra.mxu3 %v74_v5  ;;  %121 = vmatpush.msra.mxu0 %v67_v6  ;;  %v66_v13 = vld [vmem:[#allocation3 + $0xb8] sm:$0xff]  ;;  %v59_v14 = vld [vmem:[#allocation3 + $0x80] sm:$0xff]  ;;  %v60_v15 = vld [vmem:[#allocation3 + $0x88] sm:$0xff] }
   0xe   :  { %150 = vmatpush.msra.mxu1 %v68_v7  ;;  %179 = vmatpush.msra.mxu2 %v69_v8  ;;  %v61_v16 = vld [vmem:[#allocation3 + $0x90] sm:$0xff]  ;;  %v62_v17 = vld [vmem:[#allocation3 + $0x98] sm:$0xff]  ;;  %v55_v18 = vld [vmem:[#allocation3 + $0x60] sm:$0xff] }
   0xf   :  { %208 = vmatpush.msra.mxu3 %v70_v9  ;;  %122 = vmatpush.msra.mxu0 %v63_v10  ;;  %v56_v19 = vld [vmem:[#allocation3 + $0x68] sm:$0xff]  ;;  %v57_v20 = vld [vmem:[#allocation3 + $0x70] sm:$0xff]  ;;  %v58_v21 = vld [vmem:[#allocation3 + $0x78] sm:$0xff] }
  0x10   :  { %151 = vmatpush.msra.mxu1 %v64_v11  ;;  %180 = vmatpush.msra.mxu2 %v65_v12  ;;  %v51_v22 = vld [vmem:[#allocation3 + $0x40] sm:$0xff]  ;;  %v52_v23 = vld [vmem:[#allocation3 + $0x48] sm:$0xff]  ;;  %v53_v24 = vld [vmem:[#allocation3 + $0x50] sm:$0xff] }
  0x11   :  { %209 = vmatpush.msra.mxu3 %v66_v13  ;;  %123 = vmatpush.msra.mxu0 %v59_v14  ;;  %v54_v25 = vld [vmem:[#allocation3 + $0x58] sm:$0xff]  ;;  %v47_v26 = vld [vmem:[#allocation3 + $0x20] sm:$0xff]  ;;  %v48_v27 = vld [vmem:[#allocation3 + $0x28] sm:$0xff] }
  0x12   :  { %152 = vmatpush.msra.mxu1 %v60_v15  ;;  %181 = vmatpush.msra.mxu2 %v61_v16  ;;  %v49_v28 = vld [vmem:[#allocation3 + $0x30] sm:$0xff]  ;;  %v50_v29 = vld [vmem:[#allocation3 + $0x38] sm:$0xff]  ;;  %v43_v30 = vld [vmem:[#allocation3] sm:$0xff] }
  0x13   :  { %210 = vmatpush.msra.mxu3 %v62_v17  ;;  %124 = vmatpush.msra.mxu0 %v55_v18  ;;  %v44_v31 = vld [vmem:[#allocation3 + $0x8] sm:$0xff]  ;;  %v45_v32 = vld [vmem:[#allocation3 + $0x10] sm:$0xff]  ;;  %v46_v33 = vld [vmem:[#allocation3 + $0x18] sm:$0xff] }
  0x14   :  { %153 = vmatpush.msra.mxu1 %v56_v19  ;;  %182 = vmatpush.msra.mxu2 %v57_v20  ;;  %v39_v34 = vld [vmem:[%s544_s1] sm:$0xff]  ;;  %v77_v36 = vld [vmem:[%s545_s2 + $0x10] sm:$0xff]  ;;  %v40_v38 = vld [vmem:[%s544_s1 + $0x8] sm:$0xff] }
  0x15   :  { %211 = vmatpush.msra.mxu3 %v58_v21  ;;  %125 = vmatpush.msra.mxu0 %v51_v22  ;;  %v75_v35 = vld [vmem:[%s545_s2] sm:$0xff]  ;;  %v76_v39 = vld [vmem:[%s545_s2 + $0x8] sm:$0xff]  ;;  %v78_v40 = vld [vmem:[%s545_s2 + $0x18] sm:$0xff] }
  0x16   :  { %154 = vmatpush.msra.mxu1 %v52_v23  ;;  %183 = vmatpush.msra.mxu2 %v53_v24  ;;  %v244_v37 = vld [vmem:[%s546_s3] sm:$0xff]  ;;  %v245_v41 = vld [vmem:[%s546_s3 + $0x8] sm:$0xff]  ;;  %v41_v42 = vld [vmem:[%s544_s1 + $0x10] sm:$0xff] }
  0x17   :  { %212 = vmatpush.msra.mxu3 %v54_v25  ;;  %126 = vmatpush.msra.mxu0 %v47_v26  ;;  %v246_v43 = vld [vmem:[%s546_s3 + $0x10] sm:$0xff]  ;;  %v247_v44 = vld [vmem:[%s546_s3 + $0x18] sm:$0xff]  ;;  %v320_v45 = vld [vmem:[#allocation2] sm:$0x1] }
  0x18   :  { %155 = vmatpush.msra.mxu1 %v48_v27  ;;  %184 = vmatpush.msra.mxu2 %v49_v28  ;;  %v42_v46 = vld [vmem:[%s544_s1 + $0x18] sm:$0xff]  ;;  %s451_s1 = smov [#allocation6]  }
  0x19   :  { %213 = vmatpush.msra.mxu3 %v50_v29  ;;  %127 = vmatpush.msra.mxu0 %v43_v30  ;;  %s359_s3 = sshll.u32 %s451_s1, 4  ;;  %s360_s3 = int_to_ptr.vmem [resolvable:$true] %s359_s3 }
  0x1a   :  { %156 = vmatpush.msra.mxu1 %v44_v31  ;;  %185 = vmatpush.msra.mxu2 %v45_v32 }
  0x1b   :  { %214 = vmatpush.msra.mxu3 %v46_v33  ;;  %371 = vmatmul.msk.f32.vlgmr.msra.gmra.mxu0 %vm99_vm0, %v39_v34 }
  0x1c   :  { %375 = vmatmul.msk.f32.vlgmr.msra.gmra.mxu1 %vm99_vm0, %v39_v34  ;;  %379 = vmatmul.msk.f32.vlgmr.msra.gmra.mxu2 %vm99_vm0, %v39_v34 }
  0x1d   :  { %383 = vmatmul.msk.f32.vlgmr.msra.gmra.mxu3 %vm99_vm0, %v39_v34  ;;  %81 = vperm.xlu0 %392, %v75_v35  }
  0x1e   :  { %91 = vperm.xlu1 %393, %v77_v36   ;;  %250 = vperm.xlu2 %394, %v244_v37  }
  0x23   :  { %372 = vmatmul.msk.f32.gmra.mxu0 %vm99_vm0, %v40_v38 }
  0x24   :  { %376 = vmatmul.msk.f32.gmra.mxu1 %vm99_vm0, %v40_v38  ;;  %380 = vmatmul.msk.f32.gmra.mxu2 %vm99_vm0, %v40_v38 }
  0x25   :  { %384 = vmatmul.msk.f32.gmra.mxu3 %vm99_vm0, %v40_v38  ;;  %86 = vperm.xlu0 %392, %v76_v39  }
  0x26   :  { %96 = vperm.xlu1 %393, %v78_v40   ;;  %255 = vperm.xlu2 %394, %v245_v41  }
  0x2b   :  { %373 = vmatmul.msk.f32.gmra.mxu0 %vm99_vm0, %v41_v42 }
  0x2c   :  { %377 = vmatmul.msk.f32.gmra.mxu1 %vm99_vm0, %v41_v42  ;;  %381 = vmatmul.msk.f32.gmra.mxu2 %vm99_vm0, %v41_v42 }
  0x2d   :  { %385 = vmatmul.msk.f32.gmra.mxu3 %vm99_vm0, %v41_v42  ;;  %260 = vperm.xlu0 %392, %v246_v43  }
  0x2e   :  { %265 = vperm.xlu1 %393, %v247_v44   ;;  %323 = vperm.xlu2 %394, %v320_v45  }
  0x33   :  { %374 = vmatmul.msk.f32.gmra.mxu0 %vm99_vm0, %v42_v46 }
  0x34   :  { %378 = vmatmul.msk.f32.gmra.mxu1 %vm99_vm0, %v42_v46  ;;  %382 = vmatmul.msk.f32.gmra.mxu2 %vm99_vm0, %v42_v46 }
  0x35   :  { %386 = vmatmul.msk.f32.gmra.mxu3 %vm99_vm0, %v42_v46 }
  0x78   :  { %v251_v55 = vpop.permute.xlu2 %250 }
  0x80   :  { %v256_v8 = vpop.permute.xlu2 %255 }
  0x8f   :  { %v82_v49 = vpop.permute.xlu0 %81 }
  0x90   :  { %v92_v50 = vpop.permute.xlu1 %91 }
  0x97   :  { %v87_v56 = vpop.permute.xlu0 %86 }
  0x98   :  { %v129_v47 = vpop.f32.mrf.mxu0  ;;  %v97_v3 = vpop.permute.xlu1 %96 }
  0x99   :  { %v158_v48 = vpop.f32.mrf.mxu1  ;;  %v130_v57 = vadd.f32 %v129_v47, %v82_v49 }
  0x9a   :  { %v159_v62 = vadd.f32 %v158_v48, %v82_v49 }
  0x9b   :  { %v228_v4 = vmax.f32 %v130_v57, 0.0 }
  0x9c   :  { %v229_v7 = vmax.f32 %v159_v62, 0.0 }
  0x9d   :  { %v268_v16 = vmul.f32 %v251_v55, %v228_v4 }
  0x9e   :  { %v269_v21 = vmul.f32 %v251_v55, %v229_v7 }
  0x9f   :  { %v187_v51 = vpop.f32.mrf.mxu2  ;;  %v261_v15 = vpop.permute.xlu0 %260 }
  0xa0   :  { %v216_v52 = vpop.f32.mrf.mxu3  ;;  %v132_v53 = vpop.f32.mrf.mxu0  ;;  %v188_v11 = vadd.f32 %v187_v51, %v82_v49 }
  0xa1   :  { %v161_v54 = vpop.f32.mrf.mxu1  ;;  %v133_v58 = vadd.f32 %v132_v53, %v87_v56  ;;  %v217_v12 = vadd.f32 %v216_v52, %v82_v49  ;;  %v266_v38 = vpop.permute.xlu1 %265 }
  0xa2   :  { %v162_v59 = vadd.f32 %v161_v54, %v87_v56  ;;  %v230_v30 = vmax.f32 %v188_v11, 0.0 }
  0xa3   :  { %v232_v5 = vmax.f32 %v133_v58, 0.0  ;;  %v231_v31 = vmax.f32 %v217_v12, 0.0 }
  0xa4   :  { %v233_v6 = vmax.f32 %v162_v59, 0.0  ;;  %v270_v47 = vmul.f32 %v251_v55, %v230_v30 }
  0xa5   :  { %v272_v17 = vmul.f32 %v256_v8, %v232_v5  ;;  %v271_v48 = vmul.f32 %v251_v55, %v231_v31 }
  0xa6   :  { %v273_v18 = vmul.f32 %v256_v8, %v233_v6 }
  0xa7   :  { %v190_v60 = vpop.f32.mrf.mxu2  ;;  %v284_v34 = vadd.f32 %v272_v17, %v268_v16 }
  0xa8   :  { %v219_v61 = vpop.f32.mrf.mxu3  ;;  %v135_v63 = vpop.f32.mrf.mxu0  ;;  %v191_v13 = vadd.f32 %v190_v60, %v87_v56  ;;  %v293_v35 = vadd.f32 %v273_v18, %v269_v21 }
  0xa9   :  { %v164_v0 = vpop.f32.mrf.mxu1  ;;  %v136_v1 = vadd.f32 %v135_v63, %v92_v50  ;;  %v220_v14 = vadd.f32 %v219_v61, %v87_v56 }
  0xaa   :  { %v165_v2 = vadd.f32 %v164_v0, %v92_v50  ;;  %v234_v32 = vmax.f32 %v191_v13, 0.0  ;;  %v324_v13 = vpop.permute.xlu2 %323 }
  0xab   :  { %v236_v9 = vmax.f32 %v136_v1, 0.0  ;;  %v235_v33 = vmax.f32 %v220_v14, 0.0  ;;  %v326_v18 = vperm.slane %v324_v13, 0 }
  0xac   :  { %v237_v10 = vmax.f32 %v165_v2, 0.0  ;;  %v274_v45 = vmul.f32 %v256_v8, %v234_v32 }
  0xad   :  { %v276_v26 = vmul.f32 %v261_v15, %v236_v9  ;;  %v275_v46 = vmul.f32 %v256_v8, %v235_v33 }
  0xae   :  { %v277_v27 = vmul.f32 %v261_v15, %v237_v10  ;;  %v302_v60 = vadd.f32 %v274_v45, %v270_v47 }
  0xaf   :  { %v193_v19 = vpop.f32.mrf.mxu2  ;;  %v285_v41 = vadd.f32 %v284_v34, %v276_v26  ;;  %v311_v61 = vadd.f32 %v275_v46, %v271_v48  ;;  %v349_v34 = vlaneseq }
  0xb0   :  { %v222_v20 = vpop.f32.mrf.mxu3  ;;  %v194_v22 = vadd.f32 %v193_v19, %v92_v50  ;;  %v138_v24 = vpop.f32.mrf.mxu0  ;;  %v294_v42 = vadd.f32 %v293_v35, %v277_v27 }
  0xb1   :  { %v223_v23 = vadd.f32 %v222_v20, %v92_v50  ;;  %v167_v25 = vpop.f32.mrf.mxu1  ;;  %v139_v28 = vadd.f32 %v138_v24, %v97_v3  ;;  %vm351_vm4 = vcmp.lt.s32.totalorder %v349_v34, 512 }
  0xb2   :  { %v168_v29 = vadd.f32 %v167_v25, %v97_v3  ;;  %v238_v39 = vmax.f32 %v194_v22, 0.0 }
  0xb3   :  { %v240_v36 = vmax.f32 %v139_v28, 0.0  ;;  %v239_v40 = vmax.f32 %v223_v23, 0.0 }
  0xb4   :  { %v241_v37 = vmax.f32 %v168_v29, 0.0  ;;  %v278_v53 = vmul.f32 %v261_v15, %v238_v39 }
  0xb5   :  { %v280_v43 = vmul.f32 %v266_v38, %v240_v36  ;;  %v279_v54 = vmul.f32 %v261_v15, %v239_v40 }
  0xb6   :  { %v281_v44 = vmul.f32 %v266_v38, %v241_v37  ;;  %v303_v2 = vadd.f32 %v302_v60, %v278_v53 }
  0xb7   :  { %v286_v49 = vadd.f32 %v285_v41, %v280_v43  ;;  %v196_v51 = vpop.f32.mrf.mxu2  ;;  %v312_v4 = vadd.f32 %v311_v61, %v279_v54 }
  0xb8   :  { %v295_v50 = vadd.f32 %v294_v42, %v281_v44  ;;  %v225_v52 = vpop.f32.mrf.mxu3  ;;  %v197_v56 = vadd.f32 %v196_v51, %v97_v3 }
  0xb9   :  { %v226_v57 = vadd.f32 %v225_v52, %v97_v3  ;;  %v287_v58 = vrot.slane %v286_v49, 4 }
  0xba   :  { %v296_v59 = vrot.slane %v295_v50, 4  ;;  %v242_v62 = vmax.f32 %v197_v56, 0.0 }
  0xbb   :  { %v243_v63 = vmax.f32 %v226_v57, 0.0  ;;  %v288_v0 = vadd.f32 %v287_v58, %v286_v49 }
  0xbc   :  { %v297_v1 = vadd.f32 %v296_v59, %v295_v50  ;;  %v282_v5 = vmul.f32 %v266_v38, %v242_v62 }
  0xbd   :  { %v283_v55 = vmul.f32 %v266_v38, %v243_v63  ;;  %v289_v6 = vrot.slane %v288_v0, 2 }
  0xbe   :  { %v298_v7 = vrot.slane %v297_v1, 2  ;;  %v304_v8 = vadd.f32 %v303_v2, %v282_v5 }
  0xbf   :  { %v313_v9 = vadd.f32 %v312_v4, %v283_v55  ;;  %v290_v11 = vadd.f32 %v289_v6, %v288_v0 }
  0xc0   :  { %v299_v10 = vadd.f32 %v298_v7, %v297_v1  ;;  %v305_v12 = vrot.slane %v304_v8, 4 }
  0xc1   :  { %v314_v3 = vrot.slane %v313_v9, 4  ;;  %v291_v19 = vrot.slane %v290_v11, 1 }
  0xc2   :  { %v300_v14 = vrot.slane %v299_v10, 1  ;;  %v306_v15 = vadd.f32 %v305_v12, %v304_v8 }
  0xc3   :  { %v315_v16 = vadd.f32 %v314_v3, %v313_v9  ;;  %v292_v25 = vadd.f32 %v291_v19, %v290_v11 }
  0xc4   :  { %v301_v17 = vadd.f32 %v300_v14, %v299_v10  ;;  %v307_v20 = vrot.slane %v306_v15, 2 }
  0xc5   :  { %v316_v21 = vrot.slane %v315_v16, 2  ;;  %v327_v33 = vadd.f32 %v326_v18, %v292_v25 }
  0xc6   :  { %v328_v22 = vadd.f32 %v326_v18, %v301_v17  ;;  %v308_v23 = vadd.f32 %v307_v20, %v306_v15 }
  0xc7   :  { %v317_v24 = vadd.f32 %v316_v21, %v315_v16  ;;  %v331_v38 = vmax.f32 %v327_v33, 0.0 }
  0xc8   :  { %v309_v26 = vrot.slane %v308_v23, 1  ;;  %v332_v30 = vmax.f32 %v328_v22, 0.0 }
  0xc9   :  { %v318_v27 = vrot.slane %v317_v24, 1 }
  0xca   :  { %v310_v28 = vadd.f32 %v309_v26, %v308_v23  ;;  %v339_v37 = vrot.slane %v332_v30, 7 }
  0xcb   :  { %v319_v29 = vadd.f32 %v318_v27, %v317_v24 }
  0xcc   :  { %v329_v31 = vadd.f32 %v326_v18, %v310_v28  ;;  %v343_v41 = vsel %vm342_vm1, %v331_v38, %v339_v37 }
  0xcd   :  { %v330_v32 = vadd.f32 %v326_v18, %v319_v29 }
  0xce   :  { %v333_v35 = vmax.f32 %v329_v31, 0.0 }
  0xcf   :  { %v334_v36 = vmax.f32 %v330_v32, 0.0 }
  0xd0   :  { %v340_v39 = vrot.slane %v333_v35, 6 }
  0xd1   :  { %v341_v40 = vrot.slane %v334_v36, 5 }
  0xd3   :  { %v345_v42 = vsel %vm344_vm2, %v340_v39, %v341_v40 }
  0xd4   :  { %v347_v43 = vsel %vm346_vm3, %v343_v41, %v345_v42 }
  0xd5   :  { %353 = vst.msk [vmem:[#allocation6] sm:$0xf] %vm351_vm4, %v347_v43 }
  0xd6   :  { %364 = dma.vmem_to_hbm [thread:$0]  %s360_s3, 64, %s362_s25, [#allocation5]  }
  0xd7   :  { %445 = dma.done.wait [#allocation5], 64  }
  0xd8   :  { %446 = vsyncadd [#allocation5], 4294967232 }
  0xd9   :  { %369 = vsyncpa [#allocation4], 1 }
  0xda   :  { %370 = vsyncpa [#allocation5], 1 }

</bundles_post_ra>
